<compile_context>
chip_gen: v5e
topology: v5e:2x2
jax: 0.10.0
libtpu: 0.0.40
codegen_flags: <defaults>
</compile_context>

<pallas_src>
import jax
import jax.numpy as jnp
from jax.experimental import pallas as pl
from jax.experimental.pallas import tpu as pltpu


def _concat_flanks_kernel(lf_ref, x_ref, rf_ref, o_ref):
    # lf_ref: (Rt, Ll)   flank already tiled to the row tile (constant block)
    # x_ref:  (Rt, L)    one row tile of the sample
    # rf_ref: (Rt, Lr)   flank already tiled to the row tile (constant block)
    # o_ref:  (Rt, Ll + L + Lr)
    ll = lf_ref.shape[-1]
    lm = x_ref.shape[-1]
    lr = rf_ref.shape[-1]
    # Static lane-slices of the output block; pure data movement.
    # Left store starts at lane 0 (always aligned); middle/right stores are
    # unmasked full vsts whenever Ll (and Ll+L) are multiples of 128.
    o_ref[:, 0:ll] = lf_ref[...]
    o_ref[:, ll:ll + lm] = x_ref[...]
    o_ref[:, ll + lm:ll + lm + lr] = rf_ref[...]


def _choose_batch_tile(B, C, out_row_group_bytes, target_bytes=1 << 20):
    """Pick batches-per-tile Bt: a divisor of B whose row tile (Bt*C) is a
    multiple of 8 sublanes (or full-extent), with the output block <= target."""
    candidates = [d for d in range(1, B + 1)
                  if B % d == 0 and ((d * C) % 8 == 0 or d == B)]
    fitting = [d for d in candidates if d * out_row_group_bytes <= target_bytes]
    if fitting:
        return max(fitting)
    return min(candidates)


def pass_through_forward(my_sample, left_flank, right_flank):
    """Concatenate [left_flank, my_sample, right_flank] along the last axis.

    my_sample:   (B, C, L)
    left_flank:  (1, C, L_left)
    right_flank: (1, C, L_right)
    returns:     (B, C, L_left + L + L_right)
    """
    B, C, L = my_sample.shape
    _, Cl, Ll = left_flank.shape
    _, Cr, Lr = right_flank.shape
    assert Cl == C and Cr == C, "channel dims must match"
    L_tot = Ll + L + Lr
    dtype = my_sample.dtype
    itemsize = jnp.dtype(dtype).itemsize

    # Row-packed 2-D views: (B, C, L) -> (B*C, L); row r = b*C + c.
    x2d = my_sample.reshape(B * C, L)
    lf2d = left_flank.reshape(C, Ll).astype(dtype)
    rf2d = right_flank.reshape(C, Lr).astype(dtype)

    # Tile selection: output block bytes per batch row-group = C * L_tot * itemsize.
    bt = _choose_batch_tile(B, C, C * L_tot * itemsize)
    rt = bt * C                       # rows per grid step (multiple of 8 or full)
    grid = (B // bt,)

    # Flanks tiled once to exactly one row tile; every tile reuses the same
    # (constant-index) block, so it is fetched into VMEM only once.
    lf_tile = jnp.tile(lf2d, (bt, 1))  # (rt, Ll)
    rf_tile = jnp.tile(rf2d, (bt, 1))  # (rt, Lr)

    out2d = pl.pallas_call(
        _concat_flanks_kernel,
        out_shape=jax.ShapeDtypeStruct((B * C, L_tot), dtype),
        grid_spec=pltpu.PrefetchScalarGridSpec(
            num_scalar_prefetch=0,
            grid=grid,
            in_specs=[
                # left flank: same block for every grid step (broadcast)
                pl.BlockSpec((rt, Ll), lambda r: (0, 0)),
                # sample: one row tile per step
                pl.BlockSpec((rt, L), lambda r: (r, 0)),
                # right flank: broadcast
                pl.BlockSpec((rt, Lr), lambda r: (0, 0)),
            ],
            out_specs=pl.BlockSpec((rt, L_tot), lambda r: (r, 0)),
        ),
        compiler_params=pltpu.CompilerParams(
            dimension_semantics=("parallel",),
        ),
    )(lf_tile, x2d, rf_tile)

    return out2d.reshape(B, C, L_tot)


def _one_hot_flank(key, C, L, dtype=jnp.float32):
    """Deterministic synthetic DNA-like one-hot flank of shape (1, C, L)."""
    idx = jax.random.randint(key, (L,), 0, C)
    return jax.nn.one_hot(idx, C, dtype=dtype).T[None, :, :]  # (1, C, L)


if __name__ == "__main__":
    key = jax.random.PRNGKey(0)
    k_sample, k_left, k_right = jax.random.split(key, 3)

    B, C, L = 2, 4, 16
    L_LEFT, L_RIGHT = 8, 8

    my_sample = jax.random.normal(k_sample, (B, C, L), dtype=jnp.float32)
    left_flank = _one_hot_flank(k_left, C, L_LEFT)
    right_flank = _one_hot_flank(k_right, C, L_RIGHT)

    out = pass_through_forward(my_sample, left_flank, right_flank)
    out = jax.block_until_ready(out)

    # Reference check against plain-JAX concatenation (same semantics as torch.cat).
    ref = jnp.concatenate(
        [jnp.broadcast_to(left_flank, (B, C, L_LEFT)),
         my_sample,
         jnp.broadcast_to(right_flank, (B, C, L_RIGHT))],
        axis=-1,
    )
    assert out.shape == (B, C, L_LEFT + L + L_RIGHT), out.shape
    assert jnp.allclose(out, ref), "mismatch vs reference concat"

    print("KERNEL_OK")
</pallas_src>

<mosaic_0001>
module attributes {stable_mosaic.version = 11 : i64} {
  func.func @_concat_flanks_kernel(%arg0: i32, %arg1: memref<8x8xf32, #tpu.memory_space<vmem>>, %arg2: memref<8x16xf32, #tpu.memory_space<vmem>>, %arg3: memref<8x8xf32, #tpu.memory_space<vmem>>, %arg4: memref<8x32xf32, #tpu.memory_space<vmem>>) attributes {dimension_semantics = [#tpu.dimension_semantics<parallel>], iteration_bounds = array<i64: 1>, scalar_prefetch = 0 : i64, scratch_operands = 0 : i64, tpu.core_type = #tpu.core_type<tc>, window_params = [{pipeline_mode = #tpu.pipeline_mode<synchronous>, transform_indices = @transform_0, window_bounds = array<i64: 8, 8>}, {transform_indices = @transform_1, window_bounds = array<i64: 8, 16>}, {pipeline_mode = #tpu.pipeline_mode<synchronous>, transform_indices = @transform_2, window_bounds = array<i64: 8, 8>}, {transform_indices = @transform_3, window_bounds = array<i64: 8, 32>}]} {
    %c0 = arith.constant 0 : index
    %c0_0 = arith.constant 0 : index
    %0 = vector.load %arg1[%c0, %c0_0] : memref<8x8xf32, #tpu.memory_space<vmem>>, vector<8x8xf32>
    %c0_1 = arith.constant 0 : index
    %c0_2 = arith.constant 0 : index
    %1 = vector.load %arg4[%c0_1, %c0_2] : memref<8x32xf32, #tpu.memory_space<vmem>>, vector<8x8xf32>
    tpu.vector_store %arg4[%c0_1, %c0_2], %0 {strides = array<i32>} : memref<8x32xf32, #tpu.memory_space<vmem>>, vector<8x8xf32>,
    %c0_3 = arith.constant 0 : index
    %c0_4 = arith.constant 0 : index
    %2 = vector.load %arg2[%c0_3, %c0_4] : memref<8x16xf32, #tpu.memory_space<vmem>>, vector<8x16xf32>
    %c0_5 = arith.constant 0 : index
    %c8 = arith.constant 8 : index
    %3 = vector.load %arg4[%c0_5, %c8] : memref<8x32xf32, #tpu.memory_space<vmem>>, vector<8x16xf32>
    tpu.vector_store %arg4[%c0_5, %c8], %2 {strides = array<i32>} : memref<8x32xf32, #tpu.memory_space<vmem>>, vector<8x16xf32>,
    %c0_6 = arith.constant 0 : index
    %c0_7 = arith.constant 0 : index
    %4 = vector.load %arg3[%c0_6, %c0_7] : memref<8x8xf32, #tpu.memory_space<vmem>>, vector<8x8xf32>
    %c0_8 = arith.constant 0 : index
    %c24 = arith.constant 24 : index
    %5 = vector.load %arg4[%c0_8, %c24] : memref<8x32xf32, #tpu.memory_space<vmem>>, vector<8x8xf32>
    tpu.vector_store %arg4[%c0_8, %c24], %4 {strides = array<i32>} : memref<8x32xf32, #tpu.memory_space<vmem>>, vector<8x8xf32>,
    return
  }
  func.func @transform_0(%arg0: i32) -> (i32, i32) {
    %c0_i32 = arith.constant 0 : i32
    %c0_i32_0 = arith.constant 0 : i32
    %c0_i32_1 = arith.constant 0 : i32
    return %c0_i32, %c0_i32_0 : i32, i32
  }
  func.func @transform_1(%arg0: i32) -> (i32, i32) {
    %c0_i32 = arith.constant 0 : i32
    %c0_i32_0 = arith.constant 0 : i32
    return %arg0, %c0_i32 : i32, i32
  }
  func.func @transform_2(%arg0: i32) -> (i32, i32) {
    %c0_i32 = arith.constant 0 : i32
    %c0_i32_0 = arith.constant 0 : i32
    %c0_i32_1 = arith.constant 0 : i32
    return %c0_i32, %c0_i32_0 : i32, i32
  }
  func.func @transform_3(%arg0: i32) -> (i32, i32) {
    %c0_i32 = arith.constant 0 : i32
    %c0_i32_0 = arith.constant 0 : i32
    return %arg0, %c0_i32 : i32, i32
  }
}

</mosaic_0001>

<bundles_post_ra>
// kernel: tpu_custom_call.1
= control target key start
LH: loop header
LB: loop body
LE: loop exit
PB: predicated region body
PF: predicated region fallthrough
CT: control target
= control target key end

     0   :  { %8 = vsyncpa [#allocation3], 0  ;;  %s237_s0 = inlined_call_operand.hbm [shape: f32[8,8], index: 0, kind: input, shape index: {}]   ;;  %s238_s1 = inlined_call_operand.hbm [shape: f32[8,16], index: 1, kind: input, shape index: {}]   ;;  %s239_s2 = inlined_call_operand.hbm [shape: f32[8,8], index: 2, kind: input, shape index: {}]   ;;  %s240_s3 = inlined_call_operand.hbm [shape: f32[8,32], index: 3, kind: output, shape index: {}]  }
   0x1   :  { %9 = vsyncpa [#allocation6], 0  ;;  %s27_s14 = sshll.u32 %s238_s1, 4  ;;  %s28_s14 = int_to_ptr.hbm [resolvable:$true] %s27_s14 }
   0x2   :  { %10 = vsyncpa [#allocation4], 0  ;;  %s199_s15 = smov [#allocation5]   ;;  %s16_s19 = sshll.u32 %s237_s0, 4  ;;  %s17_s19 = int_to_ptr.hbm [resolvable:$true] %s16_s19 }
   0x3   :  { %s29_s16 = sshll.u32 %s199_s15, 4  ;;  %s200_s20 = smov [#allocation2]   ;;  %s30_s16 = int_to_ptr.vmem [resolvable:$true] %s29_s16 }
   0x4   :  { %32 = dma.hbm_to_vmem [thread:$0]  %s28_s14, 128, %s30_s16, [#allocation6]  }
   0x5   :  { %s18_s21 = sshll.u32 %s200_s20, 4  ;;  %s38_s24 = sshll.u32 %s239_s2, 4  ;;  %s19_s21 = int_to_ptr.vmem [resolvable:$true] %s18_s21  ;;  %s39_s24 = int_to_ptr.hbm [resolvable:$true] %s38_s24 }
   0x6   :  { %21 = dma.hbm_to_vmem [thread:$0]  %s17_s19, 128, %s19_s21, [#allocation3]  }
   0x7   :  { %s201_s1 = smov [#allocation7]  }
   0x8   :  { %s40_s25 = sshll.u32 %s201_s1, 4  ;;  %s41_s25 = int_to_ptr.vmem [resolvable:$true] %s40_s25 }
   0x9   :  { %43 = dma.hbm_to_vmem [thread:$0]  %s39_s24, 128, %s41_s25, [#allocation6]  }
   0xa   :  { %193 = dma.done.wait [#allocation3], 128  }
   0xb   :  { %194 = vsyncadd [#allocation3], 4294967168 }
   0xc   :  { %195 = dma.done.wait [#allocation6], 256  }
   0xd   :  { %196 = vsyncadd [#allocation6], 4294967040  ;;  %v59_v0 = vld [vmem:[#allocation5] sm:$0xff]  ;;  %s202_s0 = smov 8   ;;  %v66_v1 = vld [vmem:[#allocation7] sm:$0xff]  ;;  %s203_s26 = smov 24  }
   0xe   :  { %61 = vrot.lane.b32.xlu0 %v59_v0, %s202_s0  ;;  %vm57_vm0 = vcmask 64512   ;;  %v56_v2 = vld [vmem:[#allocation2] sm:$0xff]  ;;  %vm64_vm1 = vcmask 195648   ;;  %s204_s2 = smov [#allocation8]   ;;  %s80_s30 = sshll.u32 %s240_s3, 4  ;;  %vm71_vm2 = vcmask 261312   ;;  %s81_s30 = int_to_ptr.hbm [resolvable:$true] %s80_s30 }
   0xf   :  { %58 = vst.msk [vmem:[#allocation8] sm:$0xff] %vm57_vm0, %v56_v2  ;;  %s78_s27 = sshll.u32 %s204_s2, 4  ;;  %s79_s27 = int_to_ptr.vmem [resolvable:$true] %s78_s27 }
  0x16   :  { %68 = vrot.lane.b32.xlu0 %v66_v1, %s203_s26 }
  0x80   :  { %v62_v3 = vpop.permute.xlu0 %61 }
  0x81   :  { %65 = vst.msk [vmem:[#allocation8] sm:$0xff] %vm64_vm1, %v62_v3 }
  0x88   :  { %v69_v4 = vpop.permute.xlu0 %68 }
  0x89   :  { %72 = vst.msk [vmem:[#allocation8] sm:$0xff] %vm71_vm2, %v69_v4 }
  0x8a   :  { %83 = dma.vmem_to_hbm [thread:$0]  %s79_s27, 128, %s81_s30, [#allocation4]  }
  0x8b   :  { %197 = dma.done.wait [#allocation4], 128  }
  0x8c   :  { %198 = vsyncadd [#allocation4], 4294967168 }
  0x8d   :  { %88 = vsyncpa [#allocation3], 1 }
  0x8e   :  { %89 = vsyncpa [#allocation6], 1 }
  0x8f   :  { %90 = vsyncpa [#allocation4], 1 }

</bundles_post_ra>
